<compile_context>
chip_gen: v7x
topology: tpu7x:2x2x1
jax: 0.10.0
libtpu: 0.0.40
codegen_flags: <defaults>
</compile_context>

<pallas_src>
import functools

import jax
import jax.numpy as jnp
from jax.experimental import pallas as pl
from jax.experimental.pallas import tpu as pltpu


# ----------------------------------------------------------------------------
# Shared in-kernel conv accumulation: 9 small bf16 MXU dots, f32 accumulation.
#   x_refs[kd] : (1, 1, Cin, Hp*W) bf16 block (d-shifted view kd of the padded input)
#   w_ref      : (9, Cout, Cin)    bf16 (per-tap transposed weights)
# Returns acc  : (Cout, H*W)       f32
# ----------------------------------------------------------------------------
def _accumulate_conv(x_refs, w_ref, *, cout, hw, w_cols):
    acc = jnp.zeros((cout, hw), jnp.float32)
    for kd in range(3):
        xk = x_refs[kd][0, 0]                                   # (Cin, Hp*W) bf16
        for kh in range(3):
            xt = xk[:, kh * w_cols: kh * w_cols + hw]           # (Cin, H*W) static lane slice
            acc = acc + jnp.dot(w_ref[kd * 3 + kh], xt,
                                preferred_element_type=jnp.float32)
    return acc


# ----------------------------------------------------------------------------
# Pass 1: conv (no bias; it cancels in train-mode BN) -> per-plane per-channel partials
# ----------------------------------------------------------------------------
def _conv_stats_kernel(x0_ref, x1_ref, x2_ref, w_ref, sum_ref, sq_ref,
                       *, cout, hw, w_cols):
    acc = _accumulate_conv((x0_ref, x1_ref, x2_ref), w_ref,
                           cout=cout, hw=hw, w_cols=w_cols)
    sum_ref[0, 0] = jnp.sum(acc, axis=1, keepdims=True)         # (Cout, 1)
    sq_ref[0, 0] = jnp.sum(acc * acc, axis=1, keepdims=True)    # (Cout, 1)


# ----------------------------------------------------------------------------
# Pass 2: recompute conv, fused BN affine (precomputed scale/shift) + LeakyReLU(0.01),
#         store directly into the NCDHW-flattened output (lane-dense, no final transpose).
# ----------------------------------------------------------------------------
def _conv_bn_lrelu_kernel(x0_ref, x1_ref, x2_ref, w_ref, scale_ref, shift_ref, o_ref,
                          *, cout, hw, w_cols):
    acc = _accumulate_conv((x0_ref, x1_ref, x2_ref), w_ref,
                           cout=cout, hw=hw, w_cols=w_cols)
    z = acc * scale_ref[...] + shift_ref[...]                    # (Cout, H*W) f32
    o_ref[0] = jnp.where(z >= 0.0, z, 0.01 * z)


# ----------------------------------------------------------------------------
# Wrapper: CBRConv_2d forward (PyTorch NCDHW in / NCDHW out)
# ----------------------------------------------------------------------------
@jax.jit
def cbr_conv_2d_forward(x, params):
    """x: (N, Cin, D, H, W) f32. params['w']: (3, 3, Cin, Cout) == PyTorch weight[o,c,kd,kh,0]."""
    w, b, gamma, beta = params["w"], params["b"], params["gamma"], params["beta"]
    del b  # conv bias cancels exactly under train-mode BatchNorm (see header comment)
    kD, kH, cin, cout = w.shape
    N, Cin, D, H, W = x.shape
    assert Cin == cin and kD == 3 and kH == 3

    HW = H * W
    assert HW % 128 == 0 or D == 1, "H*W must be a multiple of 128 for the lane-dense NCDHW output store"
    Dp, Hp = D + 2, H + 2
    HpW = Hp * W

    # ---- single-pass input prep: NCDHW -> (N, Dp, Cin, Hp*W) bf16 (cast BEFORE pad) ----
    xt = jnp.transpose(x, (0, 2, 1, 3, 4)).astype(jnp.bfloat16)   # (N, D, Cin, H, W)
    xp = jnp.pad(xt, ((0, 0), (1, 1), (0, 0), (1, 1), (0, 0)))    # (N, Dp, Cin, Hp, W)
    xp = xp.reshape(N, Dp, cin, HpW)

    # Per-tap transposed weights (9, Cout, Cin) bf16 -- tiny, resident in VMEM.
    wt = jnp.transpose(w, (0, 1, 3, 2)).reshape(9, cout, cin).astype(jnp.bfloat16)

    cparams = pltpu.CompilerParams(
        dimension_semantics=("parallel", "parallel"),
        vmem_limit_bytes=32 * 1024 * 1024,     # well under the 64 MiB/TC v7x budget
    )

    def tap_spec(kd):
        # d-shifted view of the SAME padded array; block size 1 along Dp => +kd element offset.
        return pl.BlockSpec((1, 1, cin, HpW), lambda n, d, kd=kd: (n, d + kd, 0, 0))

    w_spec = pl.BlockSpec((9, cout, cin), lambda n, d: (0, 0, 0))
    in_specs = [tap_spec(0), tap_spec(1), tap_spec(2), w_spec]
    kern_kwargs = dict(cout=cout, hw=HW, w_cols=W)

    conv_flops = 2 * N * D * 9 * cout * cin * HW
    in_bytes = N * D * 3 * cin * HpW * 2 + 9 * cout * cin * 2

    # ---- pass 1: per-plane per-channel (sum, sumsq) partials ----------------------------
    psum, psq = pl.pallas_call(
        functools.partial(_conv_stats_kernel, **kern_kwargs),
        grid=(N, D),
        in_specs=in_specs,
        out_specs=[pl.BlockSpec((1, 1, cout, 1), lambda n, d: (n, d, 0, 0))] * 2,
        out_shape=[jax.ShapeDtypeStruct((N, D, cout, 1), jnp.float32)] * 2,
        compiler_params=cparams,
        cost_estimate=pl.CostEstimate(
            flops=conv_flops, transcendentals=0,
            bytes_accessed=in_bytes + N * D * 2 * cout * 4),
    )(xp, xp, xp, wt)

    # ---- tiny JAX glue: batch statistics -> fused scale / shift (all f32) ---------------
    M = N * D * H * W
    csum = jnp.sum(psum, axis=(0, 1))[:, 0]                      # (Cout,)
    csq = jnp.sum(psq, axis=(0, 1))[:, 0]
    mean = csum / M
    var = jnp.maximum(csq / M - mean * mean, 0.0)                 # biased var, as PyTorch BN uses
    inv_std = jax.lax.rsqrt(var + 1e-5)                           # PyTorch eps default
    scale = (gamma * inv_std).reshape(cout, 1).astype(jnp.float32)
    shift = (beta - mean * gamma * inv_std).reshape(cout, 1).astype(jnp.float32)

    # ---- pass 2: recompute conv + BN affine + LeakyReLU, write NCDHW-flat output --------
    out = pl.pallas_call(
        functools.partial(_conv_bn_lrelu_kernel, **kern_kwargs),
        grid=(N, D),
        in_specs=in_specs + [
            pl.BlockSpec((cout, 1), lambda n, d: (0, 0)),
            pl.BlockSpec((cout, 1), lambda n, d: (0, 0)),
        ],
        out_specs=pl.BlockSpec((1, cout, HW), lambda n, d: (n, 0, d)),
        out_shape=jax.ShapeDtypeStruct((N, cout, D * HW), jnp.float32),
        compiler_params=cparams,
        cost_estimate=pl.CostEstimate(
            flops=conv_flops + 4 * N * D * cout * HW, transcendentals=0,
            bytes_accessed=in_bytes + N * D * cout * HW * 4 + 2 * cout * 4),
    )(xp, xp, xp, wt, scale, shift)

    # Metadata-only reshape: (N, Cout, D*H*W) is already NCDHW flattened.
    return out.reshape(N, cout, D, H, W)


# ----------------------------------------------------------------------------
# Pure-JAX f32 reference (train-mode BatchNorm), used for a correctness check.
# ----------------------------------------------------------------------------
def cbr_conv_2d_reference(x, params, eps=1e-5):
    w, b, gamma, beta = params["w"], params["b"], params["gamma"], params["beta"]
    kD, kH, cin, cout = w.shape
    N, Cin, D, H, W = x.shape
    xp = jnp.pad(x, ((0, 0), (0, 0), (1, 1), (1, 1), (0, 0)))
    y = jnp.zeros((N, cout, D, H, W), jnp.float32)
    for kd in range(kD):
        for kh in range(kH):
            y = y + jnp.einsum("ncdhw,co->nodhw", xp[:, :, kd:kd + D, kh:kh + H, :], w[kd, kh])
    y = y + b[None, :, None, None, None]
    mean = jnp.mean(y, axis=(0, 2, 3, 4), keepdims=True)
    var = jnp.mean((y - mean) ** 2, axis=(0, 2, 3, 4), keepdims=True)
    yn = (y - mean) * jax.lax.rsqrt(var + eps) * gamma[None, :, None, None, None] \
        + beta[None, :, None, None, None]
    return jnp.where(yn >= 0, yn, 0.01 * yn)


# ----------------------------------------------------------------------------
# Deterministic synthetic parameters (not a checkpoint)
# ----------------------------------------------------------------------------
def make_cbr_params(key, in_channel=3, out_channel=3):
    kD, kH = 3, 3
    k1, k2, k3, k4 = jax.random.split(key, 4)
    fan_in = in_channel * kD * kH
    # Stored as (kD, kH, Cin, Cout); corresponds to PyTorch weight[Cout, Cin, kD, kH, 0].
    w = jax.random.normal(k1, (kD, kH, in_channel, out_channel), jnp.float32) / jnp.sqrt(float(fan_in))
    b = 0.1 * jax.random.normal(k2, (out_channel,), jnp.float32)
    gamma = 1.0 + 0.1 * jax.random.normal(k3, (out_channel,), jnp.float32)
    beta = 0.1 * jax.random.normal(k4, (out_channel,), jnp.float32)
    return {"w": w, "b": b, "gamma": gamma, "beta": beta}


if __name__ == "__main__":
    key = jax.random.PRNGKey(0)
    k_x, k_p = jax.random.split(key)

    # Small shapes consistent with the module / its U2Net usage (mid_channel=16).
    N, Cin, Cout, D, H, W = 2, 16, 16, 8, 16, 16
    x = jax.random.normal(k_x, (N, Cin, D, H, W), jnp.float32)    # PyTorch NCDHW layout
    params = make_cbr_params(k_p, in_channel=Cin, out_channel=Cout)

    out = jax.block_until_ready(cbr_conv_2d_forward(x, params))
    assert out.shape == (N, Cout, D, H, W), out.shape
    assert bool(jnp.all(jnp.isfinite(out)))

    ref = jax.block_until_ready(cbr_conv_2d_reference(x, params))
    max_err = float(jnp.max(jnp.abs(out - ref)))
    assert max_err < 1e-1, f"max abs error vs f32 reference: {max_err}"

    print("KERNEL_OK")
</pallas_src>

<mosaic_0001>
module attributes {stable_mosaic.version = 11 : i64} {
  func.func @_conv_stats_kernel(%arg0: i32, %arg1: i32, %arg2: memref<1x1x16x288xbf16, #tpu.memory_space<vmem>>, %arg3: memref<1x1x16x288xbf16, #tpu.memory_space<vmem>>, %arg4: memref<1x1x16x288xbf16, #tpu.memory_space<vmem>>, %arg5: memref<9x16x16xbf16, #tpu.memory_space<vmem>>, %arg6: memref<1x1x16x1xf32, #tpu.memory_space<vmem>>, %arg7: memref<1x1x16x1xf32, #tpu.memory_space<vmem>>) attributes {dimension_semantics = [#tpu.dimension_semantics<parallel>, #tpu.dimension_semantics<parallel>], iteration_bounds = array<i64: 2, 8>, scalar_prefetch = 0 : i64, scratch_operands = 0 : i64, tpu.core_type = #tpu.core_type<tc>, window_params = [{transform_indices = @transform_0, window_bounds = array<i64: 1, 1, 16, 288>}, {transform_indices = @transform_1, window_bounds = array<i64: 1, 1, 16, 288>}, {transform_indices = @transform_2, window_bounds = array<i64: 1, 1, 16, 288>}, {pipeline_mode = #tpu.pipeline_mode<synchronous>, transform_indices = @transform_3, window_bounds = array<i64: 9, 16, 16>}, {transform_indices = @transform_4, window_bounds = array<i64: 1, 1, 16, 1>}, {transform_indices = @transform_5, window_bounds = array<i64: 1, 1, 16, 1>}]} {
    %cst = arith.constant 0.000000e+00 : f32
    %0 = vector.broadcast %cst : f32 to vector<16x256xf32>
    %c0 = arith.constant 0 : index
    %c0_0 = arith.constant 0 : index
    %c0_1 = arith.constant 0 : index
    %c0_2 = arith.constant 0 : index
    %1 = vector.load %arg2[%c0, %c0_0, %c0_1, %c0_2] : memref<1x1x16x288xbf16, #tpu.memory_space<vmem>>, vector<1x1x16x288xbf16>
    %2 = vector.shape_cast %1 : vector<1x1x16x288xbf16> to vector<16x288xbf16>
    %3 = vector.extract_strided_slice %2 {offsets = [0, 0], sizes = [16, 256], strides = [1, 1]} : vector<16x288xbf16> to vector<16x256xbf16>
    %c0_3 = arith.constant 0 : index
    %c0_4 = arith.constant 0 : index
    %c0_5 = arith.constant 0 : index
    %4 = vector.load %arg5[%c0_3, %c0_4, %c0_5] : memref<9x16x16xbf16, #tpu.memory_space<vmem>>, vector<1x16x16xbf16>
    %5 = vector.shape_cast %4 : vector<1x16x16xbf16> to vector<16x16xbf16>
    %cst_6 = arith.constant dense<0.000000e+00> : vector<16x256xf32>
    %6 = tpu.matmul %5, %3, %cst_6 {dimension_numbers = #tpu.dot_dimension_numbers<[1], [0], [0], [1], [0, 0, 1, 1], [], []>} : vector<16x16xbf16>, vector<16x256xbf16>, vector<16x256xf32> -> vector<16x256xf32>
    %7 = arith.addf %0, %6 : vector<16x256xf32>
    %8 = vector.extract_strided_slice %2 {offsets = [0, 16], sizes = [16, 256], strides = [1, 1]} : vector<16x288xbf16> to vector<16x256xbf16>
    %c1 = arith.constant 1 : index
    %c0_7 = arith.constant 0 : index
    %c0_8 = arith.constant 0 : index
    %9 = vector.load %arg5[%c1, %c0_7, %c0_8] : memref<9x16x16xbf16, #tpu.memory_space<vmem>>, vector<1x16x16xbf16>
    %10 = vector.shape_cast %9 : vector<1x16x16xbf16> to vector<16x16xbf16>
    %cst_9 = arith.constant dense<0.000000e+00> : vector<16x256xf32>
    %11 = tpu.matmul %10, %8, %cst_9 {dimension_numbers = #tpu.dot_dimension_numbers<[1], [0], [0], [1], [0, 0, 1, 1], [], []>} : vector<16x16xbf16>, vector<16x256xbf16>, vector<16x256xf32> -> vector<16x256xf32>
    %12 = arith.addf %7, %11 : vector<16x256xf32>
    %13 = vector.extract_strided_slice %2 {offsets = [0, 32], sizes = [16, 256], strides = [1, 1]} : vector<16x288xbf16> to vector<16x256xbf16>
    %c2 = arith.constant 2 : index
    %c0_10 = arith.constant 0 : index
    %c0_11 = arith.constant 0 : index
    %14 = vector.load %arg5[%c2, %c0_10, %c0_11] : memref<9x16x16xbf16, #tpu.memory_space<vmem>>, vector<1x16x16xbf16>
    %15 = vector.shape_cast %14 : vector<1x16x16xbf16> to vector<16x16xbf16>
    %cst_12 = arith.constant dense<0.000000e+00> : vector<16x256xf32>
    %16 = tpu.matmul %15, %13, %cst_12 {dimension_numbers = #tpu.dot_dimension_numbers<[1], [0], [0], [1], [0, 0, 1, 1], [], []>} : vector<16x16xbf16>, vector<16x256xbf16>, vector<16x256xf32> -> vector<16x256xf32>
    %17 = arith.addf %12, %16 : vector<16x256xf32>
    %c0_13 = arith.constant 0 : index
    %c0_14 = arith.constant 0 : index
    %c0_15 = arith.constant 0 : index
    %c0_16 = arith.constant 0 : index
    %18 = vector.load %arg3[%c0_13, %c0_14, %c0_15, %c0_16] : memref<1x1x16x288xbf16, #tpu.memory_space<vmem>>, vector<1x1x16x288xbf16>
    %19 = vector.shape_cast %18 : vector<1x1x16x288xbf16> to vector<16x288xbf16>
    %20 = vector.extract_strided_slice %19 {offsets = [0, 0], sizes = [16, 256], strides = [1, 1]} : vector<16x288xbf16> to vector<16x256xbf16>
    %c3 = arith.constant 3 : index
    %c0_17 = arith.constant 0 : index
    %c0_18 = arith.constant 0 : index
    %21 = vector.load %arg5[%c3, %c0_17, %c0_18] : memref<9x16x16xbf16, #tpu.memory_space<vmem>>, vector<1x16x16xbf16>
    %22 = vector.shape_cast %21 : vector<1x16x16xbf16> to vector<16x16xbf16>
    %cst_19 = arith.constant dense<0.000000e+00> : vector<16x256xf32>
    %23 = tpu.matmul %22, %20, %cst_19 {dimension_numbers = #tpu.dot_dimension_numbers<[1], [0], [0], [1], [0, 0, 1, 1], [], []>} : vector<16x16xbf16>, vector<16x256xbf16>, vector<16x256xf32> -> vector<16x256xf32>
    %24 = arith.addf %17, %23 : vector<16x256xf32>
    %25 = vector.extract_strided_slice %19 {offsets = [0, 16], sizes = [16, 256], strides = [1, 1]} : vector<16x288xbf16> to vector<16x256xbf16>
    %c4 = arith.constant 4 : index
    %c0_20 = arith.constant 0 : index
    %c0_21 = arith.constant 0 : index
    %26 = vector.load %arg5[%c4, %c0_20, %c0_21] : memref<9x16x16xbf16, #tpu.memory_space<vmem>>, vector<1x16x16xbf16>
    %27 = vector.shape_cast %26 : vector<1x16x16xbf16> to vector<16x16xbf16>
    %cst_22 = arith.constant dense<0.000000e+00> : vector<16x256xf32>
    %28 = tpu.matmul %27, %25, %cst_22 {dimension_numbers = #tpu.dot_dimension_numbers<[1], [0], [0], [1], [0, 0, 1, 1], [], []>} : vector<16x16xbf16>, vector<16x256xbf16>, vector<16x256xf32> -> vector<16x256xf32>
    %29 = arith.addf %24, %28 : vector<16x256xf32>
    %30 = vector.extract_strided_slice %19 {offsets = [0, 32], sizes = [16, 256], strides = [1, 1]} : vector<16x288xbf16> to vector<16x256xbf16>
    %c5 = arith.constant 5 : index
    %c0_23 = arith.constant 0 : index
    %c0_24 = arith.constant 0 : index
    %31 = vector.load %arg5[%c5, %c0_23, %c0_24] : memref<9x16x16xbf16, #tpu.memory_space<vmem>>, vector<1x16x16xbf16>
    %32 = vector.shape_cast %31 : vector<1x16x16xbf16> to vector<16x16xbf16>
    %cst_25 = arith.constant dense<0.000000e+00> : vector<16x256xf32>
    %33 = tpu.matmul %32, %30, %cst_25 {dimension_numbers = #tpu.dot_dimension_numbers<[1], [0], [0], [1], [0, 0, 1, 1], [], []>} : vector<16x16xbf16>, vector<16x256xbf16>, vector<16x256xf32> -> vector<16x256xf32>
    %34 = arith.addf %29, %33 : vector<16x256xf32>
    %c0_26 = arith.constant 0 : index
    %c0_27 = arith.constant 0 : index
    %c0_28 = arith.constant 0 : index
    %c0_29 = arith.constant 0 : index
    %35 = vector.load %arg4[%c0_26, %c0_27, %c0_28, %c0_29] : memref<1x1x16x288xbf16, #tpu.memory_space<vmem>>, vector<1x1x16x288xbf16>
    %36 = vector.shape_cast %35 : vector<1x1x16x288xbf16> to vector<16x288xbf16>
    %37 = vector.extract_strided_slice %36 {offsets = [0, 0], sizes = [16, 256], strides = [1, 1]} : vector<16x288xbf16> to vector<16x256xbf16>
    %c6 = arith.constant 6 : index
    %c0_30 = arith.constant 0 : index
    %c0_31 = arith.constant 0 : index
    %38 = vector.load %arg5[%c6, %c0_30, %c0_31] : memref<9x16x16xbf16, #tpu.memory_space<vmem>>, vector<1x16x16xbf16>
    %39 = vector.shape_cast %38 : vector<1x16x16xbf16> to vector<16x16xbf16>
    %cst_32 = arith.constant dense<0.000000e+00> : vector<16x256xf32>
    %40 = tpu.matmul %39, %37, %cst_32 {dimension_numbers = #tpu.dot_dimension_numbers<[1], [0], [0], [1], [0, 0, 1, 1], [], []>} : vector<16x16xbf16>, vector<16x256xbf16>, vector<16x256xf32> -> vector<16x256xf32>
    %41 = arith.addf %34, %40 : vector<16x256xf32>
    %42 = vector.extract_strided_slice %36 {offsets = [0, 16], sizes = [16, 256], strides = [1, 1]} : vector<16x288xbf16> to vector<16x256xbf16>
    %c7 = arith.constant 7 : index
    %c0_33 = arith.constant 0 : index
    %c0_34 = arith.constant 0 : index
    %43 = vector.load %arg5[%c7, %c0_33, %c0_34] : memref<9x16x16xbf16, #tpu.memory_space<vmem>>, vector<1x16x16xbf16>
    %44 = vector.shape_cast %43 : vector<1x16x16xbf16> to vector<16x16xbf16>
    %cst_35 = arith.constant dense<0.000000e+00> : vector<16x256xf32>
    %45 = tpu.matmul %44, %42, %cst_35 {dimension_numbers = #tpu.dot_dimension_numbers<[1], [0], [0], [1], [0, 0, 1, 1], [], []>} : vector<16x16xbf16>, vector<16x256xbf16>, vector<16x256xf32> -> vector<16x256xf32>
    %46 = arith.addf %41, %45 : vector<16x256xf32>
    %47 = vector.extract_strided_slice %36 {offsets = [0, 32], sizes = [16, 256], strides = [1, 1]} : vector<16x288xbf16> to vector<16x256xbf16>
    %c8 = arith.constant 8 : index
    %c0_36 = arith.constant 0 : index
    %c0_37 = arith.constant 0 : index
    %48 = vector.load %arg5[%c8, %c0_36, %c0_37] : memref<9x16x16xbf16, #tpu.memory_space<vmem>>, vector<1x16x16xbf16>
    %49 = vector.shape_cast %48 : vector<1x16x16xbf16> to vector<16x16xbf16>
    %cst_38 = arith.constant dense<0.000000e+00> : vector<16x256xf32>
    %50 = tpu.matmul %49, %47, %cst_38 {dimension_numbers = #tpu.dot_dimension_numbers<[1], [0], [0], [1], [0, 0, 1, 1], [], []>} : vector<16x16xbf16>, vector<16x256xbf16>, vector<16x256xf32> -> vector<16x256xf32>
    %51 = arith.addf %46, %50 : vector<16x256xf32>
    %cst_39 = arith.constant dense<0.000000e+00> : vector<16xf32>
    %52 = vector.multi_reduction <add>, %51, %cst_39 [1] : vector<16x256xf32> to vector<16xf32>
    %53 = vector.shape_cast %52 : vector<16xf32> to vector<16x1xf32>
    %c0_40 = arith.constant 0 : index
    %c0_41 = arith.constant 0 : index
    %c0_42 = arith.constant 0 : index
    %c0_43 = arith.constant 0 : index
    %54 = vector.load %arg6[%c0_40, %c0_41, %c0_42, %c0_43] : memref<1x1x16x1xf32, #tpu.memory_space<vmem>>, vector<1x1x16x1xf32>
    %55 = vector.shape_cast %54 : vector<1x1x16x1xf32> to vector<16x1xf32>
    %56 = vector.shape_cast %53 : vector<16x1xf32> to vector<1x1x16x1xf32>
    tpu.vector_store %arg6[%c0_40, %c0_41, %c0_42, %c0_43], %56 {strides = array<i32>} : memref<1x1x16x1xf32, #tpu.memory_space<vmem>>, vector<1x1x16x1xf32>,
    %57 = arith.mulf %51, %51 : vector<16x256xf32>
    %cst_44 = arith.constant dense<0.000000e+00> : vector<16xf32>
    %58 = vector.multi_reduction <add>, %57, %cst_44 [1] : vector<16x256xf32> to vector<16xf32>
    %59 = vector.shape_cast %58 : vector<16xf32> to vector<16x1xf32>
    %c0_45 = arith.constant 0 : index
    %c0_46 = arith.constant 0 : index
    %c0_47 = arith.constant 0 : index
    %c0_48 = arith.constant 0 : index
    %60 = vector.load %arg7[%c0_45, %c0_46, %c0_47, %c0_48] : memref<1x1x16x1xf32, #tpu.memory_space<vmem>>, vector<1x1x16x1xf32>
    %61 = vector.shape_cast %60 : vector<1x1x16x1xf32> to vector<16x1xf32>
    %62 = vector.shape_cast %59 : vector<16x1xf32> to vector<1x1x16x1xf32>
    tpu.vector_store %arg7[%c0_45, %c0_46, %c0_47, %c0_48], %62 {strides = array<i32>} : memref<1x1x16x1xf32, #tpu.memory_space<vmem>>, vector<1x1x16x1xf32>,
    return
  }
  func.func @transform_0(%arg0: i32, %arg1: i32) -> (i32, i32, i32, i32) {
    %c0_i32 = arith.constant 0 : i32
    %0 = arith.addi %arg1, %c0_i32 : i32
    %c0_i32_0 = arith.constant 0 : i32
    %c0_i32_1 = arith.constant 0 : i32
    %c0_i32_2 = arith.constant 0 : i32
    return %arg0, %0, %c0_i32_0, %c0_i32_1 : i32, i32, i32, i32
  }
  func.func @transform_1(%arg0: i32, %arg1: i32) -> (i32, i32, i32, i32) {
    %c1_i32 = arith.constant 1 : i32
    %0 = arith.addi %arg1, %c1_i32 : i32
    %c0_i32 = arith.constant 0 : i32
    %c0_i32_0 = arith.constant 0 : i32
    %c0_i32_1 = arith.constant 0 : i32
    return %arg0, %0, %c0_i32, %c0_i32_0 : i32, i32, i32, i32
  }
  func.func @transform_2(%arg0: i32, %arg1: i32) -> (i32, i32, i32, i32) {
    %c2_i32 = arith.constant 2 : i32
    %0 = arith.addi %arg1, %c2_i32 : i32
    %c0_i32 = arith.constant 0 : i32
    %c0_i32_0 = arith.constant 0 : i32
    %c0_i32_1 = arith.constant 0 : i32
    return %arg0, %0, %c0_i32, %c0_i32_0 : i32, i32, i32, i32
  }
  func.func @transform_3(%arg0: i32, %arg1: i32) -> (i32, i32, i32) {
    %c0_i32 = arith.constant 0 : i32
    %c0_i32_0 = arith.constant 0 : i32
    %c0_i32_1 = arith.constant 0 : i32
    %c0_i32_2 = arith.constant 0 : i32
    return %c0_i32, %c0_i32_0, %c0_i32_1 : i32, i32, i32
  }
  func.func @transform_4(%arg0: i32, %arg1: i32) -> (i32, i32, i32, i32) {
    %c0_i32 = arith.constant 0 : i32
    %c0_i32_0 = arith.constant 0 : i32
    %c0_i32_1 = arith.constant 0 : i32
    return %arg0, %arg1, %c0_i32, %c0_i32_0 : i32, i32, i32, i32
  }
  func.func @transform_5(%arg0: i32, %arg1: i32) -> (i32, i32, i32, i32) {
    %c0_i32 = arith.constant 0 : i32
    %c0_i32_0 = arith.constant 0 : i32
    %c0_i32_1 = arith.constant 0 : i32
    return %arg0, %arg1, %c0_i32, %c0_i32_0 : i32, i32, i32, i32
  }
}

module attributes {stable_mosaic.version = 11 : i64} {
  func.func @_conv_bn_lrelu_kernel(%arg0: i32, %arg1: i32, %arg2: memref<1x1x16x288xbf16, #tpu.memory_space<vmem>>, %arg3: memref<1x1x16x288xbf16, #tpu.memory_space<vmem>>, %arg4: memref<1x1x16x288xbf16, #tpu.memory_space<vmem>>, %arg5: memref<9x16x16xbf16, #tpu.memory_space<vmem>>, %arg6: memref<16x1xf32, #tpu.memory_space<vmem>>, %arg7: memref<16x1xf32, #tpu.memory_space<vmem>>, %arg8: memref<1x16x256xf32, #tpu.memory_space<vmem>>) attributes {dimension_semantics = [#tpu.dimension_semantics<parallel>, #tpu.dimension_semantics<parallel>], iteration_bounds = array<i64: 2, 8>, scalar_prefetch = 0 : i64, scratch_operands = 0 : i64, tpu.core_type = #tpu.core_type<tc>, window_params = [{transform_indices = @transform_0, window_bounds = array<i64: 1, 1, 16, 288>}, {transform_indices = @transform_1, window_bounds = array<i64: 1, 1, 16, 288>}, {transform_indices = @transform_2, window_bounds = array<i64: 1, 1, 16, 288>}, {pipeline_mode = #tpu.pipeline_mode<synchronous>, transform_indices = @transform_3, window_bounds = array<i64: 9, 16, 16>}, {pipeline_mode = #tpu.pipeline_mode<synchronous>, transform_indices = @transform_4, window_bounds = array<i64: 16, 1>}, {pipeline_mode = #tpu.pipeline_mode<synchronous>, transform_indices = @transform_5, window_bounds = array<i64: 16, 1>}, {transform_indices = @transform_6, window_bounds = array<i64: 1, 16, 256>}]} {
    %cst = arith.constant 0.000000e+00 : f32
    %0 = vector.broadcast %cst : f32 to vector<16x256xf32>
    %c0 = arith.constant 0 : index
    %c0_0 = arith.constant 0 : index
    %c0_1 = arith.constant 0 : index
    %c0_2 = arith.constant 0 : index
    %1 = vector.load %arg2[%c0, %c0_0, %c0_1, %c0_2] : memref<1x1x16x288xbf16, #tpu.memory_space<vmem>>, vector<1x1x16x288xbf16>
    %2 = vector.shape_cast %1 : vector<1x1x16x288xbf16> to vector<16x288xbf16>
    %3 = vector.extract_strided_slice %2 {offsets = [0, 0], sizes = [16, 256], strides = [1, 1]} : vector<16x288xbf16> to vector<16x256xbf16>
    %c0_3 = arith.constant 0 : index
    %c0_4 = arith.constant 0 : index
    %c0_5 = arith.constant 0 : index
    %4 = vector.load %arg5[%c0_3, %c0_4, %c0_5] : memref<9x16x16xbf16, #tpu.memory_space<vmem>>, vector<1x16x16xbf16>
    %5 = vector.shape_cast %4 : vector<1x16x16xbf16> to vector<16x16xbf16>
    %cst_6 = arith.constant dense<0.000000e+00> : vector<16x256xf32>
    %6 = tpu.matmul %5, %3, %cst_6 {dimension_numbers = #tpu.dot_dimension_numbers<[1], [0], [0], [1], [0, 0, 1, 1], [], []>} : vector<16x16xbf16>, vector<16x256xbf16>, vector<16x256xf32> -> vector<16x256xf32>
    %7 = arith.addf %0, %6 : vector<16x256xf32>
    %8 = vector.extract_strided_slice %2 {offsets = [0, 16], sizes = [16, 256], strides = [1, 1]} : vector<16x288xbf16> to vector<16x256xbf16>
    %c1 = arith.constant 1 : index
    %c0_7 = arith.constant 0 : index
    %c0_8 = arith.constant 0 : index
    %9 = vector.load %arg5[%c1, %c0_7, %c0_8] : memref<9x16x16xbf16, #tpu.memory_space<vmem>>, vector<1x16x16xbf16>
    %10 = vector.shape_cast %9 : vector<1x16x16xbf16> to vector<16x16xbf16>
    %cst_9 = arith.constant dense<0.000000e+00> : vector<16x256xf32>
    %11 = tpu.matmul %10, %8, %cst_9 {dimension_numbers = #tpu.dot_dimension_numbers<[1], [0], [0], [1], [0, 0, 1, 1], [], []>} : vector<16x16xbf16>, vector<16x256xbf16>, vector<16x256xf32> -> vector<16x256xf32>
    %12 = arith.addf %7, %11 : vector<16x256xf32>
    %13 = vector.extract_strided_slice %2 {offsets = [0, 32], sizes = [16, 256], strides = [1, 1]} : vector<16x288xbf16> to vector<16x256xbf16>
    %c2 = arith.constant 2 : index
    %c0_10 = arith.constant 0 : index
    %c0_11 = arith.constant 0 : index
    %14 = vector.load %arg5[%c2, %c0_10, %c0_11] : memref<9x16x16xbf16, #tpu.memory_space<vmem>>, vector<1x16x16xbf16>
    %15 = vector.shape_cast %14 : vector<1x16x16xbf16> to vector<16x16xbf16>
    %cst_12 = arith.constant dense<0.000000e+00> : vector<16x256xf32>
    %16 = tpu.matmul %15, %13, %cst_12 {dimension_numbers = #tpu.dot_dimension_numbers<[1], [0], [0], [1], [0, 0, 1, 1], [], []>} : vector<16x16xbf16>, vector<16x256xbf16>, vector<16x256xf32> -> vector<16x256xf32>
    %17 = arith.addf %12, %16 : vector<16x256xf32>
    %c0_13 = arith.constant 0 : index
    %c0_14 = arith.constant 0 : index
    %c0_15 = arith.constant 0 : index
    %c0_16 = arith.constant 0 : index
    %18 = vector.load %arg3[%c0_13, %c0_14, %c0_15, %c0_16] : memref<1x1x16x288xbf16, #tpu.memory_space<vmem>>, vector<1x1x16x288xbf16>
    %19 = vector.shape_cast %18 : vector<1x1x16x288xbf16> to vector<16x288xbf16>
    %20 = vector.extract_strided_slice %19 {offsets = [0, 0], sizes = [16, 256], strides = [1, 1]} : vector<16x288xbf16> to vector<16x256xbf16>
    %c3 = arith.constant 3 : index
    %c0_17 = arith.constant 0 : index
    %c0_18 = arith.constant 0 : index
    %21 = vector.load %arg5[%c3, %c0_17, %c0_18] : memref<9x16x16xbf16, #tpu.memory_space<vmem>>, vector<1x16x16xbf16>
    %22 = vector.shape_cast %21 : vector<1x16x16xbf16> to vector<16x16xbf16>
    %cst_19 = arith.constant dense<0.000000e+00> : vector<16x256xf32>
    %23 = tpu.matmul %22, %20, %cst_19 {dimension_numbers = #tpu.dot_dimension_numbers<[1], [0], [0], [1], [0, 0, 1, 1], [], []>} : vector<16x16xbf16>, vector<16x256xbf16>, vector<16x256xf32> -> vector<16x256xf32>
    %24 = arith.addf %17, %23 : vector<16x256xf32>
    %25 = vector.extract_strided_slice %19 {offsets = [0, 16], sizes = [16, 256], strides = [1, 1]} : vector<16x288xbf16> to vector<16x256xbf16>
    %c4 = arith.constant 4 : index
    %c0_20 = arith.constant 0 : index
    %c0_21 = arith.constant 0 : index
    %26 = vector.load %arg5[%c4, %c0_20, %c0_21] : memref<9x16x16xbf16, #tpu.memory_space<vmem>>, vector<1x16x16xbf16>
    %27 = vector.shape_cast %26 : vector<1x16x16xbf16> to vector<16x16xbf16>
    %cst_22 = arith.constant dense<0.000000e+00> : vector<16x256xf32>
    %28 = tpu.matmul %27, %25, %cst_22 {dimension_numbers = #tpu.dot_dimension_numbers<[1], [0], [0], [1], [0, 0, 1, 1], [], []>} : vector<16x16xbf16>, vector<16x256xbf16>, vector<16x256xf32> -> vector<16x256xf32>
    %29 = arith.addf %24, %28 : vector<16x256xf32>
    %30 = vector.extract_strided_slice %19 {offsets = [0, 32], sizes = [16, 256], strides = [1, 1]} : vector<16x288xbf16> to vector<16x256xbf16>
    %c5 = arith.constant 5 : index
    %c0_23 = arith.constant 0 : index
    %c0_24 = arith.constant 0 : index
    %31 = vector.load %arg5[%c5, %c0_23, %c0_24] : memref<9x16x16xbf16, #tpu.memory_space<vmem>>, vector<1x16x16xbf16>
    %32 = vector.shape_cast %31 : vector<1x16x16xbf16> to vector<16x16xbf16>
    %cst_25 = arith.constant dense<0.000000e+00> : vector<16x256xf32>
    %33 = tpu.matmul %32, %30, %cst_25 {dimension_numbers = #tpu.dot_dimension_numbers<[1], [0], [0], [1], [0, 0, 1, 1], [], []>} : vector<16x16xbf16>, vector<16x256xbf16>, vector<16x256xf32> -> vector<16x256xf32>
    %34 = arith.addf %29, %33 : vector<16x256xf32>
    %c0_26 = arith.constant 0 : index
    %c0_27 = arith.constant 0 : index
    %c0_28 = arith.constant 0 : index
    %c0_29 = arith.constant 0 : index
    %35 = vector.load %arg4[%c0_26, %c0_27, %c0_28, %c0_29] : memref<1x1x16x288xbf16, #tpu.memory_space<vmem>>, vector<1x1x16x288xbf16>
    %36 = vector.shape_cast %35 : vector<1x1x16x288xbf16> to vector<16x288xbf16>
    %37 = vector.extract_strided_slice %36 {offsets = [0, 0], sizes = [16, 256], strides = [1, 1]} : vector<16x288xbf16> to vector<16x256xbf16>
    %c6 = arith.constant 6 : index
    %c0_30 = arith.constant 0 : index
    %c0_31 = arith.constant 0 : index
    %38 = vector.load %arg5[%c6, %c0_30, %c0_31] : memref<9x16x16xbf16, #tpu.memory_space<vmem>>, vector<1x16x16xbf16>
    %39 = vector.shape_cast %38 : vector<1x16x16xbf16> to vector<16x16xbf16>
    %cst_32 = arith.constant dense<0.000000e+00> : vector<16x256xf32>
    %40 = tpu.matmul %39, %37, %cst_32 {dimension_numbers = #tpu.dot_dimension_numbers<[1], [0], [0], [1], [0, 0, 1, 1], [], []>} : vector<16x16xbf16>, vector<16x256xbf16>, vector<16x256xf32> -> vector<16x256xf32>
    %41 = arith.addf %34, %40 : vector<16x256xf32>
    %42 = vector.extract_strided_slice %36 {offsets = [0, 16], sizes = [16, 256], strides = [1, 1]} : vector<16x288xbf16> to vector<16x256xbf16>
    %c7 = arith.constant 7 : index
    %c0_33 = arith.constant 0 : index
    %c0_34 = arith.constant 0 : index
    %43 = vector.load %arg5[%c7, %c0_33, %c0_34] : memref<9x16x16xbf16, #tpu.memory_space<vmem>>, vector<1x16x16xbf16>
    %44 = vector.shape_cast %43 : vector<1x16x16xbf16> to vector<16x16xbf16>
    %cst_35 = arith.constant dense<0.000000e+00> : vector<16x256xf32>
    %45 = tpu.matmul %44, %42, %cst_35 {dimension_numbers = #tpu.dot_dimension_numbers<[1], [0], [0], [1], [0, 0, 1, 1], [], []>} : vector<16x16xbf16>, vector<16x256xbf16>, vector<16x256xf32> -> vector<16x256xf32>
    %46 = arith.addf %41, %45 : vector<16x256xf32>
    %47 = vector.extract_strided_slice %36 {offsets = [0, 32], sizes = [16, 256], strides = [1, 1]} : vector<16x288xbf16> to vector<16x256xbf16>
    %c8 = arith.constant 8 : index
    %c0_36 = arith.constant 0 : index
    %c0_37 = arith.constant 0 : index
    %48 = vector.load %arg5[%c8, %c0_36, %c0_37] : memref<9x16x16xbf16, #tpu.memory_space<vmem>>, vector<1x16x16xbf16>
    %49 = vector.shape_cast %48 : vector<1x16x16xbf16> to vector<16x16xbf16>
    %cst_38 = arith.constant dense<0.000000e+00> : vector<16x256xf32>
    %50 = tpu.matmul %49, %47, %cst_38 {dimension_numbers = #tpu.dot_dimension_numbers<[1], [0], [0], [1], [0, 0, 1, 1], [], []>} : vector<16x16xbf16>, vector<16x256xbf16>, vector<16x256xf32> -> vector<16x256xf32>
    %51 = arith.addf %46, %50 : vector<16x256xf32>
    %c0_39 = arith.constant 0 : index
    %c0_40 = arith.constant 0 : index
    %52 = vector.load %arg6[%c0_39, %c0_40] : memref<16x1xf32, #tpu.memory_space<vmem>>, vector<16x1xf32>
    %53 = vector.broadcast %52 : vector<16x1xf32> to vector<16x256xf32>
    %54 = arith.mulf %51, %53 : vector<16x256xf32>
    %c0_41 = arith.constant 0 : index
    %c0_42 = arith.constant 0 : index
    %55 = vector.load %arg7[%c0_41, %c0_42] : memref<16x1xf32, #tpu.memory_space<vmem>>, vector<16x1xf32>
    %56 = vector.broadcast %55 : vector<16x1xf32> to vector<16x256xf32>
    %57 = arith.addf %54, %56 : vector<16x256xf32>
    %cst_43 = arith.constant 0.000000e+00 : f32
    %58 = vector.broadcast %cst_43 : f32 to vector<16x256xf32>
    %59 = arith.cmpf oge, %57, %58 : vector<16x256xf32>
    %cst_44 = arith.constant 0.00999999977 : f32
    %60 = vector.broadcast %cst_44 : f32 to vector<16x256xf32>
    %61 = arith.mulf %60, %57 : vector<16x256xf32>
    %62 = arith.select %59, %57, %61 : vector<16x256xi1>, vector<16x256xf32>
    %c0_45 = arith.constant 0 : index
    %c0_46 = arith.constant 0 : index
    %c0_47 = arith.constant 0 : index
    %63 = vector.load %arg8[%c0_45, %c0_46, %c0_47] : memref<1x16x256xf32, #tpu.memory_space<vmem>>, vector<1x16x256xf32>
    %64 = vector.shape_cast %63 : vector<1x16x256xf32> to vector<16x256xf32>
    %65 = vector.shape_cast %62 : vector<16x256xf32> to vector<1x16x256xf32>
    tpu.vector_store %arg8[%c0_45, %c0_46, %c0_47], %65 {strides = array<i32>} : memref<1x16x256xf32, #tpu.memory_space<vmem>>, vector<1x16x256xf32>,
    return
  }
  func.func @transform_0(%arg0: i32, %arg1: i32) -> (i32, i32, i32, i32) {
    %c0_i32 = arith.constant 0 : i32
    %0 = arith.addi %arg1, %c0_i32 : i32
    %c0_i32_0 = arith.constant 0 : i32
    %c0_i32_1 = arith.constant 0 : i32
    %c0_i32_2 = arith.constant 0 : i32
    return %arg0, %0, %c0_i32_0, %c0_i32_1 : i32, i32, i32, i32
  }
  func.func @transform_1(%arg0: i32, %arg1: i32) -> (i32, i32, i32, i32) {
    %c1_i32 = arith.constant 1 : i32
    %0 = arith.addi %arg1, %c1_i32 : i32
    %c0_i32 = arith.constant 0 : i32
    %c0_i32_0 = arith.constant 0 : i32
    %c0_i32_1 = arith.constant 0 : i32
    return %arg0, %0, %c0_i32, %c0_i32_0 : i32, i32, i32, i32
  }
  func.func @transform_2(%arg0: i32, %arg1: i32) -> (i32, i32, i32, i32) {
    %c2_i32 = arith.constant 2 : i32
    %0 = arith.addi %arg1, %c2_i32 : i32
    %c0_i32 = arith.constant 0 : i32
    %c0_i32_0 = arith.constant 0 : i32
    %c0_i32_1 = arith.constant 0 : i32
    return %arg0, %0, %c0_i32, %c0_i32_0 : i32, i32, i32, i32
  }
  func.func @transform_3(%arg0: i32, %arg1: i32) -> (i32, i32, i32) {
    %c0_i32 = arith.constant 0 : i32
    %c0_i32_0 = arith.constant 0 : i32
    %c0_i32_1 = arith.constant 0 : i32
    %c0_i32_2 = arith.constant 0 : i32
    return %c0_i32, %c0_i32_0, %c0_i32_1 : i32, i32, i32
  }
  func.func @transform_4(%arg0: i32, %arg1: i32) -> (i32, i32) {
    %c0_i32 = arith.constant 0 : i32
    %c0_i32_0 = arith.constant 0 : i32
    %c0_i32_1 = arith.constant 0 : i32
    return %c0_i32, %c0_i32_0 : i32, i32
  }
  func.func @transform_5(%arg0: i32, %arg1: i32) -> (i32, i32) {
    %c0_i32 = arith.constant 0 : i32
    %c0_i32_0 = arith.constant 0 : i32
    %c0_i32_1 = arith.constant 0 : i32
    return %c0_i32, %c0_i32_0 : i32, i32
  }
  func.func @transform_6(%arg0: i32, %arg1: i32) -> (i32, i32, i32) {
    %c0_i32 = arith.constant 0 : i32
    %c0_i32_0 = arith.constant 0 : i32
    return %arg0, %c0_i32, %arg1 : i32, i32, i32
  }
}

</mosaic_0001>

<bundles_post_ra>
// kernel: cbr_conv_2d_forward.2
= control target key start
LH: loop header
LB: loop body
LE: loop exit
PB: predicated region body
PF: predicated region fallthrough
CT: control target
= control target key end

     0   :  { %s1443_s18 = smov 0   ;;  %s1445_s19 = smov 0   ;;  %s1591_s0 = inlined_call_operand.vmem [shape: bf16[2,10,16,288], index: 0, kind: input, shape index: {}, may-alias: {0,1,2}]   ;;  %s1592_s1 = inlined_call_operand.vmem [shape: bf16[2,10,16,288], index: 1, kind: input, shape index: {}, may-alias: {0,1,2}]   ;;  %s1593_s2 = inlined_call_operand.vmem [shape: bf16[2,10,16,288], index: 2, kind: input, shape index: {}, may-alias: {0,1,2}]   ;;  %s1594_s3 = inlined_call_operand.vmem [shape: bf16[9,16,16], index: 3, kind: input, shape index: {}]   ;;  %s1595_s4 = inlined_call_operand.vmem [shape: f32[2,8,16,1], index: 4, kind: output, shape index: {0}]   ;;  %s1596_s5 = inlined_call_operand.vmem [shape: f32[2,8,16,1], index: 5, kind: output, shape index: {1}]  }
   0x1   :  { %s1447_s20 = smov 0   ;;  %s1449_s21 = smov 0  }
   0x2   :  { %s1451_s22 = smov 0  }
   0x3 LB: > { %s25_s23 = sadd.s32 1, %s1400_s20  ;;  %s28_s24 = sadd.s32 1, %s1404_s21  ;;  %s1408_s22 = sphi %s1451_s22, %s16_s22   ;;  %s1404_s21 = sphi %s1449_s21, %s1600_s21   ;;  %s1400_s20 = sphi %s1447_s20, %s1599_s20   ;;  %s1396_s19 = sphi %s1445_s19, %s1598_s19   ;;  %s1392_s18 = sphi %s1443_s18, %s1597_s18  }
   0x4   : > { %p26_p0 = scmp.ge.s32.totalorder %s25_s23, 8  ;;  %p1215_p1 = scmp.ge.s32.totalorder %s1408_s22, 1 }
   0x5   : > { %p252_p2 = scmp.lt.s32.totalorder %s1408_s22, 17 }
   0x6   : > { %s1602_s23 = smov (%p26_p0, %s25_s23), 0  ;;  %s1604_s24 = smov (!%p26_p0, %s28_s24), %s1404_s21 }
   0x7   : > { %p253_p3 = pnand %p1215_p1, %p252_p2  ;;  %p30_p4 = scmp.ge.s32.totalorder %s1604_s24, 2 }
   0x8   : > { %p317_p5 = scmp.lt.s32.totalorder (!%p253_p3), %s1396_s19, 1  ;;  %s326_s25 = sadd.s32 (!%p253_p3), 1, %s1392_s18  ;;  %v1410_v0 = vmov (!%p253_p3), 0   ;;  %vm400_vm0 = vcmask (!%p253_p3), 916480   ;;  %v1361_v16 = vld [vmem:[%s1594_s3 + $0x20] sm:$0xff] (!%p253_p3)   ;;  %vm405_vm1 = vcmask (!%p253_p3), 130048  }
   0x9   : > { %s1606_s24 = smov (%p30_p4, %s1604_s24), 0  ;;  %256 = sbr.rel (%p253_p3) target bundleno = 564 (0x234), region = 36 }
   0xa   : > { %p329_p6 = scmp.lt.s32.totalorder (!%p253_p3), %s326_s25, 9  ;;  %p319_p7 = scmp.lt.s32.totalorder (!%p253_p3), %s1392_s18, 9  ;;  %704 = vmatprep.mubr.bf16.mxu0 (!%p253_p3), %v1410_v0  ;;  %441 = vmatprep.mubr.bf16.mxu1 (!%p253_p3), %v1410_v0  ;;  %vm519_vm2 = vcmask (!%p253_p3), 785408   ;;  %v1362_v24 = vld [vmem:[%s1594_s3 + $0x8] sm:$0xff] (!%p253_p3)   ;;  %v1364_v35 = vld [vmem:[%s1594_s3] sm:$0xff] (!%p253_p3)   ;;  %v1365_v38 = vld [vmem:[%s1594_s3 + $0x30] sm:$0xff] (!%p253_p3)  }
   0xb   : > { %s337_s30 = sadd.s32 (!%p253_p3), 2, %s1392_s18  ;;  %s1411_s12 = smov (!%p253_p3), 112   ;;  %v1363_v28 = vld [vmem:[%s1594_s3 + $0x28] sm:$0xff] (!%p253_p3)   ;;  %v1366_v43 = vld [vmem:[%s1594_s3 + $0x10] sm:$0xff] (!%p253_p3)   ;;  %v1367_v45 = vld [vmem:[%s1594_s3 + $0x38] sm:$0xff] (!%p253_p3)   ;;  %vm1006_vm3 = vcmask (!%p253_p3), 7168  }
   0xc   : > { %p340_p8 = scmp.lt.s32.totalorder (!%p253_p3), %s337_s30, 9  ;;  %v1368_v47 = vld [vmem:[%s1594_s3 + $0x18] sm:$0xff] (!%p253_p3)   ;;  %v1369_v48 = vld [vmem:[%s1594_s3 + $0x40] sm:$0xff] (!%p253_p3)   ;;  %p350_p9 = scmp.lt.s32.totalorder (!%p253_p3), %s1392_s18, 7 }
  0x10   : > { %s1608_s19 = smov (!%p317_p5, %s1396_s19), 1  ;;  %s1610_s25 = smov (!%p329_p6, %s326_s25), 9 }
  0x11   : > { %s1303_s26 = smul.u32 60, %s1608_s19  ;;  %s1612_s30 = smov (!%p340_p8, %s337_s30), 9 }
  0x12   : > { %s1304_s27 = smul.u32 6, %s1610_s25 }
  0x13   : > { %s320_s28 = scalar_select %p319_p7, %s1392_s18, 9 }
  0x14   : > { %s333_s29 = sadd.s32 %s1304_s27, %s1303_s26  ;;  %s1305_s17 = smul.u32 6, %s1612_s30 }
  0x15   : > { %s1217_s6 = sshll.u32 %s333_s29, 2  ;;  %s1302_s7 = smul.u32 6, %s320_s28 }
  0x16   : > { %s335_s10 = scalar_lea.vmem %s1592_s1, %s1217_s6  ;;  %s344_s25 = sadd.s32 %s1305_s17, %s1303_s26 }
  0x17   : > { %v1487_v1 = vld [vmem:[%s335_s10 + $0x4] ss:$12 sps:$4 sm:$0xff]   ;;  %s323_s11 = sadd.s32 %s1303_s26, %s1302_s7  ;;  %v1489_v2 = vld [vmem:[%s335_s10] ss:$12 sps:$4 sm:$0xff]   ;;  %v1352_v3 = vld [vmem:[%s335_s10 + $0x8] ss:$12 sps:$4 sm:$0xff]  }
  0x18   : > { %661 = vrot.lane.b32.xlu0 %v1487_v1, %s1411_s12  ;;  %s1216_s13 = sshll.u32 %s323_s11, 2  ;;  %659 = vrot.lane.b32.xlu1 %v1489_v2, %s1411_s12  ;;  %s1218_s27 = sshll.u32 %s344_s25, 2 }
  0x19   : > { %s325_s16 = scalar_lea.vmem %s1591_s0, %s1216_s13  ;;  %s346_s6 = scalar_lea.vmem %s1593_s2, %s1218_s27 }
  0x1a   : > { %v1353_v4 = vld [vmem:[%s325_s16 + $0x4] ss:$12 sps:$4 sm:$0xff]   ;;  %v1355_v5 = vld [vmem:[%s325_s16 + $0x8] ss:$12 sps:$4 sm:$0xff]   ;;  %s1412_s7 = smov 96   ;;  %s1614_s18 = smov (!%p350_p9, %s1392_s18), 7 }
  0x1b   : > { %v1356_v6 = vld [vmem:[%s325_s16] ss:$12 sps:$4 sm:$0xff]   ;;  %v1357_v7 = vld [vmem:[%s346_s6 + $0x4] ss:$12 sps:$4 sm:$0xff]   ;;  %v1359_v8 = vld [vmem:[%s346_s6 + $0x8] ss:$12 sps:$4 sm:$0xff]  }
  0x1c   : > { %663 = vrot.lane.b32.xlu0 %v1352_v3, %s1411_s12  ;;  %396 = vrot.lane.b32.xlu1 %v1353_v4, %s1411_s12  ;;  %v1360_v9 = vld [vmem:[%s346_s6] ss:$12 sps:$4 sm:$0xff]   ;;  %s1219_s26 = sshll.u32 %s1614_s18, 1  ;;  %s1220_s30 = sshll.u32 %s1608_s19, 4 }
  0x1d   : > { %s354_s8 = sadd.s32 %s1220_s30, %s1219_s26 }
  0x1e   : > { %s1221_s9 = sshll.u32 %s354_s8, 3 }
  0x1f   : > { %s365_s15 = scalar_lea.vmem %s1596_s5, %s1221_s9 }
  0x20   : > { %398 = vrot.lane.b32.xlu0 %v1355_v5, %s1411_s12  ;;  %729 = vrot.lane.b32.xlu1 %v1487_v1, %s1412_s7 }
  0x24   : > { %731 = vrot.lane.b32.xlu0 %v1352_v3, %s1412_s7  ;;  %394 = vrot.lane.b32.xlu1 %v1356_v6, %s1411_s12 }
  0x28   : > { %727 = vrot.lane.b32.xlu0 %v1489_v2, %s1412_s7  ;;  %515 = vrot.lane.b32.xlu1 %v1353_v4, %s1412_s7 }
  0x2c   : > { %517 = vrot.lane.b32.xlu0 %v1355_v5, %s1412_s7  ;;  %874 = vrot.lane.b32.xlu1 %v1357_v7, %s1411_s12 }
  0x30   : > { %876 = vrot.lane.b32.xlu0 %v1359_v8, %s1411_s12  ;;  %513 = vrot.lane.b32.xlu1 %v1356_v6, %s1412_s7 }
  0x34   : > { %872 = vrot.lane.b32.xlu0 %v1360_v9, %s1411_s12  ;;  %942 = vrot.lane.b32.xlu1 %v1357_v7, %s1412_s7  ;;  %s356_s12 = scalar_lea.vmem %s1595_s4, %s1221_s9 }
  0x38   : > { %944 = vrot.lane.b32.xlu0 %v1359_v8, %s1412_s7  ;;  %940 = vrot.lane.b32.xlu1 %v1360_v9, %s1412_s7 }
  0x8a   : > { %v662_v10 = vpop.permute.xlu0 %661  ;;  %v660_v11 = vpop.permute.xlu1 %659 }
  0x8b   : > { %v665_v15 = vsel %vm400_vm0, %v660_v11, %v662_v10 }
  0x8e   : > { %v664_v12 = vpop.permute.xlu0 %663  ;;  %v397_v13 = vpop.permute.xlu1 %396 }
  0x8f   : > { %v666_v14 = vsel %vm400_vm0, %v662_v10, %v664_v12 }
  0x90   : > { %672 = vmatprep.subr.bf16.mxu0 %v666_v14 }
  0x91   : > { %673 = vmatpush1.bf16.msra.mxu0 %v665_v15 }
  0x92   : > { %v399_v17 = vpop.permute.xlu0 %398  ;;  %v730_v18 = vpop.permute.xlu1 %729 }
  0x93   : > { %v402_v19 = vsel %vm400_vm0, %v397_v13, %v399_v17 }
  0x94   : > { %409 = vmatprep.subr.bf16.mxu1 %v402_v19  ;;  %1248 = vmatmul.mubr.msk.bf16.vlgmr.msra.gmra.mrb[0].mxu0 %vm405_vm1, %v1361_v16 }
  0x95   : > { %772 = vmatprep.mubr.bf16.mxu0 %v1410_v0 }
  0x96   : > { %v732_v20 = vpop.permute.xlu0 %731  ;;  %v395_v21 = vpop.permute.xlu1 %394 }
  0x97   : > { %v734_v22 = vsel %vm519_vm2, %v730_v18, %v732_v20  ;;  %v401_v23 = vsel %vm400_vm0, %v395_v21, %v397_v13 }
  0x98   : > { %740 = vmatprep.subr.bf16.mxu0 %v734_v22  ;;  %410 = vmatpush1.bf16.msra.mxu1 %v401_v23 }
  0x99   : > { %462 = vmatprep.subr.bf16.mxu1 %v1353_v4 }
  0x9a   : > { %v728_v25 = vpop.permute.xlu0 %727  ;;  %v516_v27 = vpop.permute.xlu1 %515 }
  0x9b   : > { %v733_v26 = vsel %vm519_vm2, %v728_v25, %v730_v18  ;;  %1231 = vmatmul.mubr.msk.bf16.vlgmr.msra.gmra.mrb[0].mxu1 %vm405_vm1, %v1362_v24 }
  0x9c   : > { %741 = vmatpush1.bf16.msra.mxu0 %v733_v26  ;;  %463 = vmatpush1.bf16.msra.mxu1 %v1356_v6 }
  0x9d   : > { %494 = vmatprep.mubr.bf16.mxu1 %v1410_v0  ;;  %812 = vmatprep.subr.bf16.mxu0 %v1357_v7 }
  0x9e   : > { %v518_v29 = vpop.permute.xlu0 %517  ;;  %v875_v30 = vpop.permute.xlu1 %874 }
  0x9f   : > { %v521_v31 = vsel %vm519_vm2, %v516_v27, %v518_v29 }
  0xa0   : > { %1252 = vmatmul.mubr.msk.bf16.vlgmr.msra.gmra.mrb[0].mxu0 %vm405_vm1, %v1363_v28  ;;  %527 = vmatprep.subr.bf16.mxu1 %v521_v31 }
  0xa1   : > { %813 = vmatpush1.bf16.msra.mxu0 %v1360_v9  ;;  %844 = vmatprep.mubr.bf16.mxu0 %v1410_v0 }
  0xa2   : > { %v877_v32 = vpop.permute.xlu0 %876  ;;  %v514_v33 = vpop.permute.xlu1 %513 }
  0xa3   : > { %v879_v34 = vsel %vm400_vm0, %v875_v30, %v877_v32  ;;  %v520_v36 = vsel %vm519_vm2, %v514_v33, %v516_v27 }
  0xa4   : > { %885 = vmatprep.subr.bf16.mxu0 %v879_v34 }
  0xa6   : > { %v873_v37 = vpop.permute.xlu0 %872  ;;  %v943_v40 = vpop.permute.xlu1 %942 }
  0xa7   : > { %1233 = vmatmul.mubr.msk.bf16.vlgmr.msra.gmra.mrb[0].mxu1 %vm405_vm1, %v1364_v35  ;;  %v878_v39 = vsel %vm400_vm0, %v873_v37, %v875_v30 }
  0xa8   : > { %528 = vmatpush1.bf16.msra.mxu1 %v520_v36  ;;  %559 = vmatprep.mubr.bf16.mxu1 %v1410_v0 }
  0xa9   : > { %599 = vmatprep.subr.bf16.mxu1 %v1487_v1 }
  0xaa   : > { %v945_v41 = vpop.permute.xlu0 %944  ;;  %v941_v44 = vpop.permute.xlu1 %940 }
  0xab   : > { %v947_v42 = vsel %vm519_vm2, %v943_v40, %v945_v41  ;;  %v946_v46 = vsel %vm519_vm2, %v941_v44, %v943_v40 }
  0xac   : > { %1258 = vmatmul.mubr.msk.bf16.vlgmr.msra.gmra.mrb[0].mxu0 %vm405_vm1, %v1365_v38 }
  0xad   : > { %886 = vmatpush1.bf16.msra.mxu0 %v878_v39  ;;  %917 = vmatprep.mubr.bf16.mxu0 %v1410_v0 }
  0xae   : > { %953 = vmatprep.subr.bf16.mxu0 %v947_v42 }
  0xb3   : > { %1237 = vmatmul.mubr.msk.bf16.vlgmr.msra.gmra.mrb[0].mxu1 %vm405_vm1, %v1366_v43 }
  0xb4   : > { %600 = vmatpush1.bf16.msra.mxu1 %v1489_v2  ;;  %631 = vmatprep.mubr.bf16.mxu1 %v1410_v0 }
  0xb8   : > { %1263 = vmatmul.mubr.msk.bf16.vlgmr.msra.gmra.mrb[0].mxu0 %vm405_vm1, %v1367_v45 }
  0xb9   : > { %954 = vmatpush1.bf16.msra.mxu0 %v946_v46  ;;  %985 = vmatprep.mubr.bf16.mxu0 %v1410_v0 }
  0xbf   : > { %1243 = vmatmul.mubr.msk.bf16.vlgmr.msra.gmra.mrb[0].mxu1 %vm405_vm1, %v1368_v47 }
  0xc4   : > { %1267 = vmatmul.mubr.msk.bf16.vlgmr.msra.gmra.mrb[0].mxu0 %vm405_vm1, %v1369_v48 }
 0x192   : > { %v633_v49 = vpop.f32.mrb[0].mxu1 }
 0x193   : > { %v635_v50 = vpop.f32.mrb[1].mxu1 }
 0x194   : > { %v637_v51 = vpop.f32.mrb[2].mxu1 }
 0x195   : > { %v639_v52 = vpop.f32.mrb[3].mxu1 }
 0x197   : > { %v987_v53 = vpop.f32.mrb[0].mxu0 }
 0x198   : > { %v1270_v54 = vadd.f32 %v987_v53, %v633_v49  ;;  %v989_v55 = vpop.f32.mrb[1].mxu0 }
 0x199   : > { %v1271_v56 = vadd.f32 %v989_v55, %v635_v50  ;;  %v991_v57 = vpop.f32.mrb[2].mxu0 }
 0x19a   : > { %v1009_v58 = vmul.f32 %v1270_v54, %v1270_v54  ;;  %v1272_v59 = vadd.f32 %v991_v57, %v637_v51  ;;  %v993_v60 = vpop.f32.mrb[3].mxu0 }
 0x19b   : > { %v1010_v61 = vmul.f32 %v1271_v56, %v1271_v56  ;;  %v1273_v62 = vadd.f32 %v993_v60, %v639_v52  ;;  %v1000_v63 = vadd.f32 %v1271_v56, %v1270_v54 }
 0x19c   : > { %v1011_v0 = vmul.f32 %v1272_v59, %v1272_v59 }
 0x19d   : > { %v1012_v1 = vmul.f32 %v1273_v62, %v1273_v62  ;;  %1001 = vadd.xlane.f32.xlu0 %v1000_v63  ;;  %v1003_v2 = vadd.f32 %v1273_v62, %v1272_v59  ;;  %v1013_v3 = vadd.f32 %v1010_v61, %v1009_v58 }
 0x19f   : > { %1004 = vadd.xlane.f32.xlu1 %v1003_v2  ;;  %v1016_v4 = vadd.f32 %v1012_v1, %v1011_v0 }
 0x1a1   : > { %1014 = vadd.xlane.f32.xlu0 %v1013_v3 }
 0x1a5   : > { %1017 = vadd.xlane.f32.xlu0 %v1016_v4 }
 0x22a   : > { %v1002_v5 = vpop.xlane.xlu0 %1001 }
 0x22b   : > { %1007 = vst.msk [vmem:[%s356_s12] sm:$0xff] %vm1006_vm3, %v1002_v5 }
 0x22c   : > { %v1005_v6 = vpop.xlane.xlu1 %1004 }
 0x22d   : > { %1008 = vst.msk [vmem:[%s356_s12 + $0x8] sm:$0xff] %vm1006_vm3, %v1005_v6 }
 0x22e   : > { %v1015_v7 = vpop.xlane.xlu0 %1014 }
 0x22f   : > { %1019 = vst.msk [vmem:[%s365_s15] sm:$0xff] %vm1006_vm3, %v1015_v7 }
 0x232   : > { %v1018_v8 = vpop.xlane.xlu0 %1017 }
 0x233   : > { %1020 = vst.msk [vmem:[%s365_s15 + $0x8] sm:$0xff] %vm1006_vm3, %v1018_v8 }
 0x234 PF: > { %s16_s22 = sadd.s32 1, %s1408_s22   ;;  %s1597_s18 = smov %s1400_s20 }
 0x235   : > { %p13_p10 = scmp.ge.s32.totalorder %s16_s22, 18   ;;  %s1598_s19 = smov %s1404_s21 }
 0x236   : > { %s1599_s20 = smov %s1602_s23  ;;  %s1600_s21 = smov %s1606_s24 }
 0x237   :  { %15 = sbr.rel (!%p13_p10) target bundleno = 3 (0x3), region = 92 }

// kernel: cbr_conv_2d_forward.3
= control target key start
LH: loop header
LB: loop body
LE: loop exit
PB: predicated region body
PF: predicated region fallthrough
CT: control target
= control target key end

     0   :  { %s1658_s0 = inlined_call_operand.vmem [shape: bf16[2,10,16,288], index: 0, kind: input, shape index: {}, may-alias: {0,1,2}]   ;;  %s1659_s1 = inlined_call_operand.vmem [shape: bf16[2,10,16,288], index: 1, kind: input, shape index: {}, may-alias: {0,1,2}]   ;;  %s1660_s2 = inlined_call_operand.vmem [shape: bf16[2,10,16,288], index: 2, kind: input, shape index: {}, may-alias: {0,1,2}]   ;;  %s1661_s3 = inlined_call_operand.vmem [shape: bf16[9,16,16], index: 3, kind: input, shape index: {}]   ;;  %s1662_s4 = inlined_call_operand.vmem [shape: f32[16,1], index: 4, kind: input, shape index: {}]   ;;  %s1663_s5 = inlined_call_operand.vmem [shape: f32[16,1], index: 5, kind: input, shape index: {}]   ;;  %s1664_s6 = inlined_call_operand.vmem [shape: f32[2,16,2048], index: 6, kind: output, shape index: {}]  }
   0x1   :  { %1665 = sst [smem:[#allocation3_spill]] %s1659_s1 }
   0x2   :  { %s1460_s21 = smov 0   ;;  %s1462_s22 = smov 0  }
   0x3   :  { %s1464_s23 = smov 0   ;;  %s1466_s24 = smov 0  }
   0x4   :  { %s1468_s25 = smov 0   ;;  %s1470_s26 = smov 0  }
   0x5   :  { %s1472_s27 = smov 0  }
   0x6 LB: > { %s25_s28 = sadd.s32 1, %s1412_s25  ;;  %s28_s29 = sadd.s32 1, %s1416_s26  ;;  %s1420_s27 = sphi %s1472_s27, %s16_s27   ;;  %s1416_s26 = sphi %s1470_s26, %s1673_s26   ;;  %s1412_s25 = sphi %s1468_s25, %s1672_s25   ;;  %s1408_s24 = sphi %s1466_s24, %s1671_s24   ;;  %s1404_s23 = sphi %s1464_s23, %s1670_s23   ;;  %s1400_s22 = sphi %s1462_s22, %s1669_s22   ;;  %s1396_s21 = sphi %s1460_s21, %s1668_s21  }
   0x7   : > { %p26_p0 = scmp.ge.s32.totalorder %s25_s28, 8  ;;  %s1190_s30 = sadd.s32 4294967295, %s1420_s27  }
   0x8   : > { %p198_p1 = scmp.ne.s32.totalorder %s1400_s22, %s1396_s21  ;;  %p199_p2 = scmp.eq.s32.totalorder %s1190_s30, 15 }
   0x9   : > { %s1675_s28 = smov (%p26_p0, %s25_s28), 0  ;;  %s1677_s29 = smov (!%p26_p0, %s28_s29), %s1416_s26 }
   0xa   : > { %s184_s7 = ssub.s32 %s1412_s25, %s1675_s28  ;;  %p30_p3 = scmp.ge.s32.totalorder %s1677_s29, 2 }
   0xb   : > { %p1194_p4 = scmp.ge.s32.totalorder %s1420_s27, 1  ;;  %p1506_p5 = por %p199_p2, %p198_p1 }
   0xc   : > { %p272_p6 = scmp.lt.s32.totalorder %s1420_s27, 17  ;;  %s1679_s29 = smov (%p30_p3, %s1677_s29), 0 }
   0xd   : > { %s183_s9 = ssub.s32 %s1416_s26, %s1679_s29  ;;  %s188_s11 = sadd.s32 1, %s1400_s22 }
   0xe   : > { %p273_p7 = pnand %p1194_p4, %p272_p6  ;;  %s185_s10 = sor.u32 %s184_s7, %s183_s9 }
   0xf   : > { %p186_p8 = scmp.eq.s32.totalorder %s185_s10, 0  ;;  %p325_p9 = scmp.lt.s32.totalorder (!%p273_p7), %s1408_s24, 1  ;;  %v1422_v0 = vmov (!%p273_p7), 0   ;;  %v992_v10 = vld [vmem:[%s1662_s4 + $0x8] sm:$0xff] (!%p273_p7)  ;;  %v991_v11 = vld [vmem:[%s1662_s4] sm:$0xff] (!%p273_p7)  ;;  %vm391_vm0 = vcmask (!%p273_p7), 916480  }
  0x10   : > { %276 = sbr.rel (%p273_p7) target bundleno = 437 (0x1b5), region = 44  ;;  %s334_s13 = sadd.s32 (!%p273_p7), 1, %s1404_s23  ;;  %695 = vmatprep.mubr.bf16.mxu0 (!%p273_p7), %v1422_v0  ;;  %432 = vmatprep.mubr.bf16.mxu1 (!%p273_p7), %v1422_v0  ;;  %v1007_v12 = vld [vmem:[%s1663_s5] sm:$0xff] (!%p273_p7)  ;;  %v1008_v13 = vld [vmem:[%s1663_s5 + $0x8] sm:$0xff] (!%p273_p7)  ;;  %vm396_vm1 = vcmask (!%p273_p7), 130048   ;;  %vm510_vm2 = vcmask (!%p273_p7), 785408  }
  0x11   : > { %s1517_s12 = scalar_select %p186_p8, %s1400_s22, %s188_s11  }
  0x12   : > { %p337_p10 = scmp.lt.s32.totalorder (!%p273_p7), %s334_s13, 9  ;;  %p327_p11 = scmp.lt.s32.totalorder (!%p273_p7), %s1404_s23, 9  ;;  %1344 = vset.pattern.permute.xlu1 (!%p273_p7), %v1422_v0  ;;  %1343 = vset.pattern.permute.xlu0 (!%p273_p7), %v1422_v0  ;;  %v1357_v20 = vld [vmem:[%s1661_s3 + $0x20] sm:$0xff] (!%p273_p7)   ;;  %v1358_v28 = vld [vmem:[%s1661_s3 + $0x8] sm:$0xff] (!%p273_p7)   ;;  %v1361_v42 = vld [vmem:[%s1661_s3 + $0x30] sm:$0xff] (!%p273_p7)  }
  0x13   : > { %s345_s19 = sadd.s32 (!%p273_p7), 2, %s1404_s23  ;;  %s1667_s1 = sld [smem:[#allocation3_spill]] (!%p273_p7)  ;;  %v1359_v32 = vld [vmem:[%s1661_s3 + $0x28] sm:$0xff] (!%p273_p7)   ;;  %v1360_v39 = vld [vmem:[%s1661_s3] sm:$0xff] (!%p273_p7)   ;;  %v1362_v47 = vld [vmem:[%s1661_s3 + $0x10] sm:$0xff] (!%p273_p7)  }
  0x14   : > { %p348_p12 = scmp.lt.s32.totalorder (!%p273_p7), %s345_s19, 9  ;;  %v1363_v49 = vld [vmem:[%s1661_s3 + $0x38] sm:$0xff] (!%p273_p7)   ;;  %v1365_v52 = vld [vmem:[%s1661_s3 + $0x40] sm:$0xff] (!%p273_p7)  }
  0x15   : > { %v1364_v51 = vld [vmem:[%s1661_s3 + $0x18] sm:$0xff] (!%p273_p7)  }
  0x17   : > { %s326_s14 = scalar_select %p325_p9, %s1408_s24, 1 }
  0x18   : > { %s1681_s13 = smov (!%p337_p10, %s334_s13), 9  ;;  %s1683_s19 = smov (!%p348_p12, %s345_s19), 9 }
  0x19   : > { %s1522_s15 = smul.u32 60, %s326_s14 }
  0x1a   : > { %s1282_s16 = smul.u32 6, %s1681_s13  ;;  %s1423_s13 = smov 112  }
  0x1b   : > { %s328_s17 = scalar_select %p327_p11, %s1404_s23, 9 }
  0x1c   : > { %s341_s18 = sadd.s32 %s1282_s16, %s1522_s15 }
  0x1d   : > { %s1197_s20 = sshll.u32 %s341_s18, 2  ;;  %s1280_s30 = smul.u32 6, %s328_s17 }
  0x1e   : > { %s343_s10 = scalar_lea.vmem %s1667_s1, %s1197_s20  ;;  %s1283_s20 = smul.u32 6, %s1683_s19 }
  0x1f   : > { %v1535_v1 = vld [vmem:[%s343_s10 + $0x4] ss:$12 sps:$4 sm:$0xff]   ;;  %s331_s11 = sadd.s32 %s1522_s15, %s1280_s30  ;;  %v1538_v2 = vld [vmem:[%s343_s10] ss:$12 sps:$4 sm:$0xff]   ;;  %v1348_v3 = vld [vmem:[%s343_s10 + $0x8] ss:$12 sps:$4 sm:$0xff]  }
  0x20   : > { %652 = vrot.lane.b32.xlu0 %v1535_v1, %s1423_s13  ;;  %s1196_s14 = sshll.u32 %s331_s11, 2  ;;  %650 = vrot.lane.b32.xlu1 %v1538_v2, %s1423_s13  ;;  %s352_s30 = sadd.s32 %s1283_s20, %s1522_s15 }
  0x21   : > { %s333_s18 = scalar_lea.vmem %s1658_s0, %s1196_s14  ;;  %s1198_s7 = sshll.u32 %s352_s30, 2 }
  0x22   : > { %v1349_v4 = vld [vmem:[%s333_s18 + $0x4] ss:$12 sps:$4 sm:$0xff]   ;;  %v1351_v5 = vld [vmem:[%s333_s18 + $0x8] ss:$12 sps:$4 sm:$0xff]   ;;  %s354_s11 = scalar_lea.vmem %s1660_s2, %s1198_s7  ;;  %s1424_s1 = smov 96  }
  0x23   : > { %v1352_v6 = vld [vmem:[%s333_s18] ss:$12 sps:$4 sm:$0xff]   ;;  %v1353_v7 = vld [vmem:[%s354_s11 + $0x4] ss:$12 sps:$4 sm:$0xff]   ;;  %v1355_v8 = vld [vmem:[%s354_s11 + $0x8] ss:$12 sps:$4 sm:$0xff]  }
  0x24   : > { %654 = vrot.lane.b32.xlu0 %v1348_v3, %s1423_s13  ;;  %387 = vrot.lane.b32.xlu1 %v1349_v4, %s1423_s13  ;;  %v1356_v9 = vld [vmem:[%s354_s11] ss:$12 sps:$4 sm:$0xff]   ;;  %s322_s10 = sand.u32 1, %s1396_s21   ;;  %s1243_s15 = sshll.u32 (%p1506_p5), %s1404_s23, 1 }
  0x25   : > { %s1195_s11 = sshll.u32 %s322_s10, 5  ;;  %s1244_s19 = sshll.u32 (%p1506_p5), %s1408_s24, 5 }
  0x26   : > { %s324_s21 = scalar_lea.vmem [#allocation2], %s1195_s11  ;;  %s1048_s14 = sadd.s32 (%p1506_p5), %s1244_s19, %s1243_s15 }
  0x27   : > { %s1245_s16 = sshll.u32 (%p1506_p5), %s1048_s14, 3 }
  0x28   : > { %389 = vrot.lane.b32.xlu0 %v1351_v5, %s1423_s13  ;;  %720 = vrot.lane.b32.xlu1 %v1535_v1, %s1424_s1  ;;  %s1050_s20 = scalar_lea.vmem (%p1506_p5), %s1664_s6, %s1245_s16 }
  0x2c   : > { %722 = vrot.lane.b32.xlu0 %v1348_v3, %s1424_s1  ;;  %385 = vrot.lane.b32.xlu1 %v1352_v6, %s1423_s13 }
  0x30   : > { %718 = vrot.lane.b32.xlu0 %v1538_v2, %s1424_s1  ;;  %506 = vrot.lane.b32.xlu1 %v1349_v4, %s1424_s1 }
  0x34   : > { %508 = vrot.lane.b32.xlu0 %v1351_v5, %s1424_s1  ;;  %865 = vrot.lane.b32.xlu1 %v1353_v7, %s1423_s13 }
  0x38   : > { %867 = vrot.lane.b32.xlu0 %v1355_v8, %s1423_s13  ;;  %504 = vrot.lane.b32.xlu1 %v1352_v6, %s1424_s1 }
  0x3c   : > { %863 = vrot.lane.b32.xlu0 %v1356_v9, %s1423_s13  ;;  %933 = vrot.lane.b32.xlu1 %v1353_v7, %s1424_s1 }
  0x40   : > { %935 = vrot.lane.b32.xlu0 %v1355_v8, %s1424_s1  ;;  %931 = vrot.lane.b32.xlu1 %v1356_v9, %s1424_s1 }
  0x44   : > { %1000 = vperm.xlu1 %1344, %v992_v10   ;;  %995 = vperm.xlu0 %1343, %v991_v11  }
  0x48   : > { %1011 = vperm.xlu1 %1344, %v1007_v12   ;;  %1016 = vperm.xlu0 %1343, %v1008_v13  }
  0x92   : > { %v653_v14 = vpop.permute.xlu0 %652  ;;  %v651_v15 = vpop.permute.xlu1 %650 }
  0x93   : > { %v656_v19 = vsel %vm391_vm0, %v651_v15, %v653_v14 }
  0x96   : > { %v655_v16 = vpop.permute.xlu0 %654  ;;  %v388_v17 = vpop.permute.xlu1 %387 }
  0x97   : > { %v657_v18 = vsel %vm391_vm0, %v653_v14, %v655_v16 }
  0x98   : > { %663 = vmatprep.subr.bf16.mxu0 %v657_v18 }
  0x99   : > { %664 = vmatpush1.bf16.msra.mxu0 %v656_v19 }
  0x9a   : > { %v390_v21 = vpop.permute.xlu0 %389  ;;  %v721_v22 = vpop.permute.xlu1 %720 }
  0x9b   : > { %v393_v23 = vsel %vm391_vm0, %v388_v17, %v390_v21 }
  0x9c   : > { %400 = vmatprep.subr.bf16.mxu1 %v393_v23  ;;  %1222 = vmatmul.mubr.msk.bf16.vlgmr.msra.gmra.mrb[0].mxu0 %vm396_vm1, %v1357_v20 }
  0x9d   : > { %763 = vmatprep.mubr.bf16.mxu0 %v1422_v0 }
  0x9e   : > { %v723_v24 = vpop.permute.xlu0 %722  ;;  %v386_v25 = vpop.permute.xlu1 %385 }
  0x9f   : > { %v725_v26 = vsel %vm510_vm2, %v721_v22, %v723_v24  ;;  %v392_v27 = vsel %vm391_vm0, %v386_v25, %v388_v17 }
  0xa0   : > { %731 = vmatprep.subr.bf16.mxu0 %v725_v26  ;;  %401 = vmatpush1.bf16.msra.mxu1 %v392_v27 }
  0xa1   : > { %453 = vmatprep.subr.bf16.mxu1 %v1349_v4 }
  0xa2   : > { %v719_v29 = vpop.permute.xlu0 %718  ;;  %v507_v31 = vpop.permute.xlu1 %506 }
  0xa3   : > { %v724_v30 = vsel %vm510_vm2, %v719_v29, %v721_v22  ;;  %1205 = vmatmul.mubr.msk.bf16.vlgmr.msra.gmra.mrb[0].mxu1 %vm396_vm1, %v1358_v28 }
  0xa4   : > { %732 = vmatpush1.bf16.msra.mxu0 %v724_v30  ;;  %454 = vmatpush1.bf16.msra.mxu1 %v1352_v6 }
  0xa5   : > { %485 = vmatprep.mubr.bf16.mxu1 %v1422_v0  ;;  %803 = vmatprep.subr.bf16.mxu0 %v1353_v7 }
  0xa6   : > { %v509_v33 = vpop.permute.xlu0 %508  ;;  %v866_v34 = vpop.permute.xlu1 %865 }
  0xa7   : > { %v512_v35 = vsel %vm510_vm2, %v507_v31, %v509_v33 }
  0xa8   : > { %1226 = vmatmul.mubr.msk.bf16.vlgmr.msra.gmra.mrb[0].mxu0 %vm396_vm1, %v1359_v32  ;;  %518 = vmatprep.subr.bf16.mxu1 %v512_v35 }
  0xa9   : > { %804 = vmatpush1.bf16.msra.mxu0 %v1356_v9  ;;  %835 = vmatprep.mubr.bf16.mxu0 %v1422_v0 }
  0xaa   : > { %v868_v36 = vpop.permute.xlu0 %867  ;;  %v505_v37 = vpop.permute.xlu1 %504 }
  0xab   : > { %v870_v38 = vsel %vm391_vm0, %v866_v34, %v868_v36  ;;  %v511_v40 = vsel %vm510_vm2, %v505_v37, %v507_v31 }
  0xac   : > { %876 = vmatprep.subr.bf16.mxu0 %v870_v38 }
  0xae   : > { %v864_v41 = vpop.permute.xlu0 %863  ;;  %v934_v44 = vpop.permute.xlu1 %933 }
  0xaf   : > { %1207 = vmatmul.mubr.msk.bf16.vlgmr.msra.gmra.mrb[0].mxu1 %vm396_vm1, %v1360_v39  ;;  %v869_v43 = vsel %vm391_vm0, %v864_v41, %v866_v34 }
  0xb0   : > { %519 = vmatpush1.bf16.msra.mxu1 %v511_v40  ;;  %550 = vmatprep.mubr.bf16.mxu1 %v1422_v0 }
  0xb1   : > { %590 = vmatprep.subr.bf16.mxu1 %v1535_v1 }
  0xb2   : > { %v936_v45 = vpop.permute.xlu0 %935  ;;  %v932_v48 = vpop.permute.xlu1 %931 }
  0xb3   : > { %v938_v46 = vsel %vm510_vm2, %v934_v44, %v936_v45  ;;  %v937_v50 = vsel %vm510_vm2, %v932_v48, %v934_v44 }
  0xb4   : > { %1232 = vmatmul.mubr.msk.bf16.vlgmr.msra.gmra.mrb[0].mxu0 %vm396_vm1, %v1361_v42 }
  0xb5   : > { %877 = vmatpush1.bf16.msra.mxu0 %v869_v43  ;;  %908 = vmatprep.mubr.bf16.mxu0 %v1422_v0 }
  0xb6   : > { %944 = vmatprep.subr.bf16.mxu0 %v938_v46 }
  0xbb   : > { %1211 = vmatmul.mubr.msk.bf16.vlgmr.msra.gmra.mrb[0].mxu1 %vm396_vm1, %v1362_v47 }
  0xbc   : > { %591 = vmatpush1.bf16.msra.mxu1 %v1538_v2  ;;  %622 = vmatprep.mubr.bf16.mxu1 %v1422_v0 }
  0xc0   : > { %1237 = vmatmul.mubr.msk.bf16.vlgmr.msra.gmra.mrb[0].mxu0 %vm396_vm1, %v1363_v49 }
  0xc1   : > { %945 = vmatpush1.bf16.msra.mxu0 %v937_v50  ;;  %976 = vmatprep.mubr.bf16.mxu0 %v1422_v0 }
  0xc3   : > { %v1001_v54 = vpop.permute.xlu1 %1000  ;;  %v996_v59 = vpop.permute.xlu0 %995 }
  0xc7   : > { %1217 = vmatmul.mubr.msk.bf16.vlgmr.msra.gmra.mrb[0].mxu1 %vm396_vm1, %v1364_v51  ;;  %v1012_v0 = vpop.permute.xlu1 %1011  ;;  %v1017_v9 = vpop.permute.xlu0 %1016 }
  0xcc   : > { %1241 = vmatmul.mubr.msk.bf16.vlgmr.msra.gmra.mrb[0].mxu0 %vm396_vm1, %v1365_v52 }
 0x19a   : > { %v624_v53 = vpop.f32.mrb[0].mxu1 }
 0x19b   : > { %v626_v55 = vpop.f32.mrb[1].mxu1 }
 0x19c   : > { %v628_v56 = vpop.f32.mrb[2].mxu1 }
 0x19d   : > { %v630_v57 = vpop.f32.mrb[3].mxu1 }
 0x19f   : > { %v978_v58 = vpop.f32.mrb[0].mxu0 }
 0x1a0   : > { %v1248_v60 = vadd.f32 %v978_v58, %v624_v53  ;;  %v980_v61 = vpop.f32.mrb[1].mxu0 }
 0x1a1   : > { %v1249_v62 = vadd.f32 %v980_v61, %v626_v55  ;;  %v982_v63 = vpop.f32.mrb[2].mxu0 }
 0x1a2   : > { %v1003_v1 = vmul.f32 %v1248_v60, %v996_v59  ;;  %v1250_v2 = vadd.f32 %v982_v63, %v628_v56  ;;  %v984_v3 = vpop.f32.mrb[3].mxu0 }
 0x1a3   : > { %v1004_v4 = vmul.f32 %v1249_v62, %v996_v59  ;;  %v1251_v5 = vadd.f32 %v984_v3, %v630_v57 }
 0x1a4   : > { %v1019_v6 = vadd.f32 %v1012_v0, %v1003_v1  ;;  %v1005_v7 = vmul.f32 %v1250_v2, %v1001_v54 }
 0x1a5   : > { %v1020_v8 = vadd.f32 %v1012_v0, %v1004_v4  ;;  %v1006_v10 = vmul.f32 %v1251_v5, %v1001_v54 }
 0x1a6   : > { %vm1023_vm3 = vcmp.ge.f32.partialorder %v1019_v6, 0.0  ;;  %v1027_v11 = vmul.f32 0.01, %v1019_v6  ;;  %v1021_v12 = vadd.f32 %v1017_v9, %v1005_v7  ;;  %1045 = sbr.rel (!%p1506_p5) target bundleno = 437 (0x1b5), region = 48 }
 0x1a7   : > { %vm1024_vm4 = vcmp.ge.f32.partialorder %v1020_v8, 0.0  ;;  %v1028_v13 = vmul.f32 0.01, %v1020_v8  ;;  %v1022_v14 = vadd.f32 %v1017_v9, %v1006_v10 }
 0x1a8   : > { %v1031_v15 = vsel %vm1023_vm3, %v1019_v6, %v1027_v11  ;;  %vm1025_vm5 = vcmp.ge.f32.partialorder %v1021_v12, 0.0  ;;  %v1029_v16 = vmul.f32 0.01, %v1021_v12 }
 0x1a9   : > { %v1032_v17 = vsel %vm1024_vm4, %v1020_v8, %v1028_v13  ;;  %1035 = vst [vmem:[%s324_s21] sm:$0xff] %v1031_v15  ;;  %vm1026_vm6 = vcmp.ge.f32.partialorder %v1022_v14, 0.0  ;;  %v1030_v18 = vmul.f32 0.01, %v1022_v14 }
 0x1aa   : > { %1036 = vst [vmem:[%s324_s21 + $0x8] sm:$0xff] %v1032_v17  ;;  %v1033_v19 = vsel %vm1025_vm5, %v1021_v12, %v1029_v16 }
 0x1ab   : > { %v1034_v20 = vsel %vm1026_vm6, %v1022_v14, %v1030_v18  ;;  %1037 = vst [vmem:[%s324_s21 + $0x10] sm:$0xff] %v1033_v19 }
 0x1ac   : > { %1038 = vst [vmem:[%s324_s21 + $0x18] sm:$0xff] %v1034_v20 }
 0x1b0   : > { %v1063_v21 = vld [vmem:[%s324_s21] sm:$0xff] }
 0x1b1   : > { %v1065_v22 = vld [vmem:[%s324_s21 + $0x8] sm:$0xff]  ;;  %1064 = vst [vmem:[%s1050_s20] sm:$0xff] %v1063_v21 }
 0x1b2   : > { %v1067_v23 = vld [vmem:[%s324_s21 + $0x10] sm:$0xff]  ;;  %1066 = vst [vmem:[%s1050_s20 + $0x8] sm:$0xff] %v1065_v22 }
 0x1b3   : > { %v1069_v24 = vld [vmem:[%s324_s21 + $0x18] sm:$0xff]  ;;  %1068 = vst [vmem:[%s1050_s20 + $0x80] sm:$0xff] %v1067_v23 }
 0x1b4   : > { %1070 = vst [vmem:[%s1050_s20 + $0x88] sm:$0xff] %v1069_v24 }
 0x1b5 PF: > { %s16_s27 = sadd.s32 1, %s1420_s27   ;;  %s1668_s21 = smov %s1400_s22 }
 0x1b6   : > { %p13_p13 = scmp.ge.s32.totalorder %s16_s27, 18   ;;  %s1669_s22 = smov %s1517_s12 }
 0x1b7   : > { %s1670_s23 = smov %s1412_s25  ;;  %s1671_s24 = smov %s1416_s26 }
 0x1b8   : > { %s1672_s25 = smov %s1675_s28  ;;  %s1673_s26 = smov %s1679_s29 }
 0x1b9   :  { %15 = sbr.rel (!%p13_p13) target bundleno = 6 (0x6), region = 111 }

</bundles_post_ra>
